<compile_context>
chip_gen: v7x
topology: tpu7x:2x2x1
jax: 0.10.0
libtpu: 0.0.40
codegen_flags: <defaults>
</compile_context>

<pallas_src>
import functools
import math

import jax
import jax.numpy as jnp
from jax import lax
from jax.experimental import pallas as pl
from jax.experimental.pallas import tpu as pltpu


def _round_up(x, m):
    return (x + m - 1) // m * m


def _gelu(x, approximate):
    if approximate:
        # tanh approximation -> EUP slot (cheaper); small numeric delta vs torch default.
        c = math.sqrt(2.0 / math.pi)
        return 0.5 * x * (1.0 + jnp.tanh(c * (x + 0.044715 * x * x * x)))
    # PyTorch nn.GELU() default: exact erf formulation.
    return 0.5 * x * (1.0 + lax.erf(x * (1.0 / math.sqrt(2.0))))


def mlp_kernel(x_ref, w1_ref, b1_ref, w2_ref, b2_ref, g_ref, beta_ref,
               o_ref, acc_ref, *, eps, approximate_gelu):
    k = pl.program_id(1)
    nk = pl.num_programs(1)

    @pl.when(k == 0)
    def _init():
        # Fold the fc2 bias into the accumulator init (broadcast exactly once).
        acc_ref[...] = jnp.broadcast_to(b2_ref[...].astype(jnp.float32),
                                        acc_ref.shape)

    # fc1 chunk: [tm, D] @ [D, tH] on the MXU, f32 accumulation.
    h = jnp.dot(x_ref[...], w1_ref[...], preferred_element_type=jnp.float32)
    h = h + b1_ref[...].astype(jnp.float32)
    h = _gelu(h, approximate_gelu)
    # dropout(p=0.0) is the identity.

    # fc2 chunk: [tm, tH] @ [tH, O], accumulated across the H grid axis in f32.
    acc_ref[...] += jnp.dot(h.astype(w2_ref.dtype), w2_ref[...],
                            preferred_element_type=jnp.float32)

    @pl.when(k == nk - 1)
    def _finalize():
        # LayerNorm over the output-feature (lane) dimension, eps=1e-6.
        y = acc_ref[...]
        mean = jnp.mean(y, axis=-1, keepdims=True)
        yc = y - mean
        var = jnp.mean(yc * yc, axis=-1, keepdims=True)
        inv = lax.rsqrt(var + eps)
        out = yc * inv * g_ref[...].astype(jnp.float32) \
              + beta_ref[...].astype(jnp.float32)
        o_ref[...] = out.astype(o_ref.dtype)


def mlp_pallas(x, w1, b1, w2, b2, ln_w, ln_b, *,
               eps=1e-6, tm=256, tH=None,
               compute_dtype=None, approximate_gelu=False):
    """x: [B, N, C_in]; returns [B, N, C_out]. Matches new_Mlp.forward (drop=0)."""
    B, N, D = x.shape
    H = w1.shape[1]
    O = w2.shape[1]
    M = B * N

    cd = compute_dtype if compute_dtype is not None else x.dtype
    out_dtype = x.dtype

    # --- tiling ----------------------------------------------------------
    # Row tile: as large as requested but never larger than the (8-rounded)
    # token count; pad M to a multiple of tm (padded rows are sliced off).
    tm = int(min(tm, _round_up(M, 8)))
    M_pad = _round_up(M, tm)

    # Hidden-dim chunk: multiple of 128 when possible, else the full H
    # (block dim equal to the full array dim is always legal).
    if tH is None:
        tH = next((c for c in (512, 256, 128) if H % c == 0), H)
    assert H % tH == 0

    # --- operand prep ----------------------------------------------------
    x2d = x.reshape(M, D).astype(cd)
    if M_pad != M:
        x2d = jnp.pad(x2d, ((0, M_pad - M), (0, 0)))
    w1c = w1.astype(cd)
    w2c = w2.astype(cd)
    b1_2d = b1.reshape(1, H).astype(jnp.float32)
    b2_2d = b2.reshape(1, O).astype(jnp.float32)
    g_2d = ln_w.reshape(1, O).astype(jnp.float32)
    bt_2d = ln_b.reshape(1, O).astype(jnp.float32)

    # --- explicit VMEM budget (double-buffered tiles + resident acc) ------
    bpe = jnp.dtype(cd).itemsize
    est = (2 * tm * D * bpe                     # x tiles
           + 2 * (D * tH + tH * O) * bpe        # w1 / w2 chunks
           + 2 * (tH + 3 * O) * 4               # biases + LN params
           + 2 * tm * O * jnp.dtype(out_dtype).itemsize  # out tile
           + tm * O * 4)                        # f32 accumulator scratch
    vmem_limit = int(min(max(2 * est, 32 * 1024 * 1024), 64 * 1024 * 1024))

    kernel = functools.partial(mlp_kernel, eps=float(eps),
                               approximate_gelu=approximate_gelu)

    out2d = pl.pallas_call(
        kernel,
        out_shape=jax.ShapeDtypeStruct((M_pad, O), out_dtype),
        grid=(M_pad // tm, H // tH),
        in_specs=[
            pl.BlockSpec((tm, D), lambda i, k: (i, 0)),   # x rows (invariant in k)
            pl.BlockSpec((D, tH), lambda i, k: (0, k)),   # w1 H-chunk
            pl.BlockSpec((1, tH), lambda i, k: (0, k)),   # b1 H-chunk
            pl.BlockSpec((tH, O), lambda i, k: (k, 0)),   # w2 H-chunk
            pl.BlockSpec((1, O), lambda i, k: (0, 0)),    # b2
            pl.BlockSpec((1, O), lambda i, k: (0, 0)),    # LN weight
            pl.BlockSpec((1, O), lambda i, k: (0, 0)),    # LN bias
        ],
        out_specs=pl.BlockSpec((tm, O), lambda i, k: (i, 0)),
        scratch_shapes=[pltpu.VMEM((tm, O), jnp.float32)],
        compiler_params=pltpu.CompilerParams(
            dimension_semantics=("parallel", "arbitrary"),
            vmem_limit_bytes=vmem_limit,
        ),
    )(x2d, w1c, b1_2d, w2c, b2_2d, g_2d, bt_2d)

    if M_pad != M:
        out2d = out2d[:M]
    return out2d.reshape(B, N, O)


def init_mlp_params(key, in_features, hidden_features, out_features,
                    dtype=jnp.float32):
    """Deterministic init mimicking nn.Linear / nn.LayerNorm defaults."""
    k1, k2, k3, k4 = jax.random.split(key, 4)
    bound1 = 1.0 / math.sqrt(in_features)
    bound2 = 1.0 / math.sqrt(hidden_features)
    # Stored transposed relative to torch (torch weight is [out, in]); here [in, out].
    w1 = jax.random.uniform(k1, (in_features, hidden_features), dtype, -bound1, bound1)
    b1 = jax.random.uniform(k2, (hidden_features,), dtype, -bound1, bound1)
    w2 = jax.random.uniform(k3, (hidden_features, out_features), dtype, -bound2, bound2)
    b2 = jax.random.uniform(k4, (out_features,), dtype, -bound2, bound2)
    ln_w = jnp.ones((out_features,), dtype)   # LayerNorm default weight
    ln_b = jnp.zeros((out_features,), dtype)  # LayerNorm default bias
    return w1, b1, w2, b2, ln_w, ln_b


def mlp_reference(x, w1, b1, w2, b2, ln_w, ln_b, eps=1e-6):
    h = x @ w1 + b1
    h = 0.5 * h * (1.0 + lax.erf(h / jnp.sqrt(2.0)))
    y = h @ w2 + b2
    mean = jnp.mean(y, axis=-1, keepdims=True)
    var = jnp.mean((y - mean) ** 2, axis=-1, keepdims=True)
    return (y - mean) / jnp.sqrt(var + eps) * ln_w + ln_b


if __name__ == "__main__":
    key = jax.random.PRNGKey(0)
    kx, kp = jax.random.split(key)

    B, N = 2, 8                 # batch, tokens
    in_features = 32
    hidden_features = 64
    out_features = 32

    x = jax.random.normal(kx, (B, N, in_features), jnp.float32)
    w1, b1, w2, b2, ln_w, ln_b = init_mlp_params(kp, in_features,
                                                 hidden_features, out_features)

    ref = mlp_reference(x, w1, b1, w2, b2, ln_w, ln_b)

    # f32 path (exact-erf GELU) -> tight tolerance vs reference.
    out = mlp_pallas(x, w1, b1, w2, b2, ln_w, ln_b)
    out = jax.block_until_ready(out)
    assert out.shape == (B, N, out_features)
    assert jnp.allclose(out, ref, atol=1e-5, rtol=1e-5), "f32 mismatch vs reference"

    # bf16 MXU path (f32 accumulation) -> looser tolerance.
    out_bf16 = mlp_pallas(x, w1, b1, w2, b2, ln_w, ln_b,
                          compute_dtype=jnp.bfloat16)
    out_bf16 = jax.block_until_ready(out_bf16)
    assert jnp.allclose(out_bf16.astype(jnp.float32), ref, atol=1e-1, rtol=1e-1), \
        "bf16 mismatch vs reference"

    print("KERNEL_OK")
</pallas_src>

<mosaic_0001>
module attributes {stable_mosaic.version = 11 : i64} {
  func.func @mlp_kernel(%arg0: i32, %arg1: i32, %arg2: memref<16x32xf32, #tpu.memory_space<vmem>>, %arg3: memref<32x64xf32, #tpu.memory_space<vmem>>, %arg4: memref<1x64xf32, #tpu.memory_space<vmem>>, %arg5: memref<64x32xf32, #tpu.memory_space<vmem>>, %arg6: memref<1x32xf32, #tpu.memory_space<vmem>>, %arg7: memref<1x32xf32, #tpu.memory_space<vmem>>, %arg8: memref<1x32xf32, #tpu.memory_space<vmem>>, %arg9: memref<16x32xf32, #tpu.memory_space<vmem>>, %arg10: memref<16x32xf32, #tpu.memory_space<vmem>>) attributes {dimension_semantics = [#tpu.dimension_semantics<parallel>, #tpu.dimension_semantics<arbitrary>], iteration_bounds = array<i64: 1, 1>, scalar_prefetch = 0 : i64, scratch_operands = 1 : i64, tpu.core_type = #tpu.core_type<tc>, window_params = [{transform_indices = @transform_0, window_bounds = array<i64: 16, 32>}, {transform_indices = @transform_1, window_bounds = array<i64: 32, 64>}, {transform_indices = @transform_2, window_bounds = array<i64: 1, 64>}, {transform_indices = @transform_3, window_bounds = array<i64: 64, 32>}, {pipeline_mode = #tpu.pipeline_mode<synchronous>, transform_indices = @transform_4, window_bounds = array<i64: 1, 32>}, {pipeline_mode = #tpu.pipeline_mode<synchronous>, transform_indices = @transform_5, window_bounds = array<i64: 1, 32>}, {pipeline_mode = #tpu.pipeline_mode<synchronous>, transform_indices = @transform_6, window_bounds = array<i64: 1, 32>}, {transform_indices = @transform_7, window_bounds = array<i64: 16, 32>}]} {
    %c0_i32 = arith.constant 0 : i32
    %0 = arith.cmpi eq, %arg1, %c0_i32 : i32
    %1 = arith.extui %0 : i1 to i32
    %c0_i32_0 = arith.constant 0 : i32
    %2 = arith.cmpi ne, %1, %c0_i32_0 : i32
    scf.if %2 {
      %c0_18 = arith.constant 0 : index
      %c0_19 = arith.constant 0 : index
      %25 = vector.load %arg6[%c0_18, %c0_19] : memref<1x32xf32, #tpu.memory_space<vmem>>, vector<1x32xf32>
      %26 = vector.shape_cast %25 : vector<1x32xf32> to vector<1x32xf32>
      %27 = vector.broadcast %26 : vector<1x32xf32> to vector<16x32xf32>
      %c0_20 = arith.constant 0 : index
      %c0_21 = arith.constant 0 : index
      %28 = vector.load %arg10[%c0_20, %c0_21] : memref<16x32xf32, #tpu.memory_space<vmem>>, vector<16x32xf32>
      tpu.vector_store %arg10[%c0_20, %c0_21], %27 {strides = array<i32>} : memref<16x32xf32, #tpu.memory_space<vmem>>, vector<16x32xf32>,
    } else {
    }
    %c0 = arith.constant 0 : index
    %c0_1 = arith.constant 0 : index
    %3 = vector.load %arg2[%c0, %c0_1] : memref<16x32xf32, #tpu.memory_space<vmem>>, vector<16x32xf32>
    %c0_2 = arith.constant 0 : index
    %c0_3 = arith.constant 0 : index
    %4 = vector.load %arg3[%c0_2, %c0_3] : memref<32x64xf32, #tpu.memory_space<vmem>>, vector<32x64xf32>
    %cst = arith.constant dense<0.000000e+00> : vector<16x64xf32>
    %5 = tpu.matmul %3, %4, %cst {dimension_numbers = #tpu.dot_dimension_numbers<[1], [0], [0], [1], [0, 0, 1, 1], [], []>} : vector<16x32xf32>, vector<32x64xf32>, vector<16x64xf32> -> vector<16x64xf32>
    %c0_4 = arith.constant 0 : index
    %c0_5 = arith.constant 0 : index
    %6 = vector.load %arg4[%c0_4, %c0_5] : memref<1x64xf32, #tpu.memory_space<vmem>>, vector<1x64xf32>
    %7 = vector.broadcast %6 : vector<1x64xf32> to vector<16x64xf32>
    %8 = arith.addf %5, %7 : vector<16x64xf32>
    %cst_6 = arith.constant 5.000000e-01 : f32
    %9 = vector.broadcast %cst_6 : f32 to vector<16x64xf32>
    %10 = arith.mulf %9, %8 : vector<16x64xf32>
    %cst_7 = arith.constant 0.707106769 : f32
    %11 = vector.broadcast %cst_7 : f32 to vector<16x64xf32>
    %12 = arith.mulf %8, %11 : vector<16x64xf32>
    %13 = math.erf %12 : vector<16x64xf32>
    %cst_8 = arith.constant 1.000000e+00 : f32
    %14 = vector.broadcast %cst_8 : f32 to vector<16x64xf32>
    %15 = arith.addf %14, %13 : vector<16x64xf32>
    %16 = arith.mulf %10, %15 : vector<16x64xf32>
    %c0_9 = arith.constant 0 : index
    %c0_10 = arith.constant 0 : index
    %17 = vector.load %arg10[%c0_9, %c0_10] : memref<16x32xf32, #tpu.memory_space<vmem>>, vector<16x32xf32>
    %c0_11 = arith.constant 0 : index
    %c0_12 = arith.constant 0 : index
    %18 = vector.load %arg5[%c0_11, %c0_12] : memref<64x32xf32, #tpu.memory_space<vmem>>, vector<64x32xf32>
    %cst_13 = arith.constant dense<0.000000e+00> : vector<16x32xf32>
    %19 = tpu.matmul %16, %18, %cst_13 {dimension_numbers = #tpu.dot_dimension_numbers<[1], [0], [0], [1], [0, 0, 1, 1], [], []>} : vector<16x64xf32>, vector<64x32xf32>, vector<16x32xf32> -> vector<16x32xf32>
    %20 = arith.addf %17, %19 : vector<16x32xf32>
    %c0_14 = arith.constant 0 : index
    %c0_15 = arith.constant 0 : index
    %21 = vector.load %arg10[%c0_14, %c0_15] : memref<16x32xf32, #tpu.memory_space<vmem>>, vector<16x32xf32>
    tpu.vector_store %arg10[%c0_14, %c0_15], %20 {strides = array<i32>} : memref<16x32xf32, #tpu.memory_space<vmem>>, vector<16x32xf32>,
    %c0_i32_16 = arith.constant 0 : i32
    %22 = arith.cmpi eq, %arg1, %c0_i32_16 : i32
    %23 = arith.extui %22 : i1 to i32
    %c0_i32_17 = arith.constant 0 : i32
    %24 = arith.cmpi ne, %23, %c0_i32_17 : i32
    scf.if %24 {
      %c0_18 = arith.constant 0 : index
      %c0_19 = arith.constant 0 : index
      %25 = vector.load %arg10[%c0_18, %c0_19] : memref<16x32xf32, #tpu.memory_space<vmem>>, vector<16x32xf32>
      %cst_20 = arith.constant dense<0.000000e+00> : vector<16xf32>
      %26 = vector.multi_reduction <add>, %25, %cst_20 [1] : vector<16x32xf32> to vector<16xf32>
      %27 = vector.shape_cast %26 : vector<16xf32> to vector<16x1xf32>
      %cst_21 = arith.constant 3.200000e+01 : f32
      %28 = vector.broadcast %cst_21 : f32 to vector<16x1xf32>
      %29 = arith.divf %27, %28 : vector<16x1xf32>
      %30 = vector.broadcast %29 : vector<16x1xf32> to vector<16x32xf32>
      %31 = arith.subf %25, %30 : vector<16x32xf32>
      %32 = arith.mulf %31, %31 : vector<16x32xf32>
      %cst_22 = arith.constant dense<0.000000e+00> : vector<16xf32>
      %33 = vector.multi_reduction <add>, %32, %cst_22 [1] : vector<16x32xf32> to vector<16xf32>
      %34 = vector.shape_cast %33 : vector<16xf32> to vector<16x1xf32>
      %cst_23 = arith.constant 3.200000e+01 : f32
      %35 = vector.broadcast %cst_23 : f32 to vector<16x1xf32>
      %36 = arith.divf %34, %35 : vector<16x1xf32>
      %cst_24 = arith.constant 9.99999997E-7 : f32
      %37 = vector.broadcast %cst_24 : f32 to vector<16x1xf32>
      %38 = arith.addf %36, %37 : vector<16x1xf32>
      %39 = math.rsqrt %38 : vector<16x1xf32>
      %40 = vector.broadcast %39 : vector<16x1xf32> to vector<16x32xf32>
      %41 = arith.mulf %31, %40 : vector<16x32xf32>
      %c0_25 = arith.constant 0 : index
      %c0_26 = arith.constant 0 : index
      %42 = vector.load %arg7[%c0_25, %c0_26] : memref<1x32xf32, #tpu.memory_space<vmem>>, vector<1x32xf32>
      %43 = vector.broadcast %42 : vector<1x32xf32> to vector<16x32xf32>
      %44 = arith.mulf %41, %43 : vector<16x32xf32>
      %c0_27 = arith.constant 0 : index
      %c0_28 = arith.constant 0 : index
      %45 = vector.load %arg8[%c0_27, %c0_28] : memref<1x32xf32, #tpu.memory_space<vmem>>, vector<1x32xf32>
      %46 = vector.broadcast %45 : vector<1x32xf32> to vector<16x32xf32>
      %47 = arith.addf %44, %46 : vector<16x32xf32>
      %c0_29 = arith.constant 0 : index
      %c0_30 = arith.constant 0 : index
      %48 = vector.load %arg9[%c0_29, %c0_30] : memref<16x32xf32, #tpu.memory_space<vmem>>, vector<16x32xf32>
      tpu.vector_store %arg9[%c0_29, %c0_30], %47 {strides = array<i32>} : memref<16x32xf32, #tpu.memory_space<vmem>>, vector<16x32xf32>,
    } else {
    }
    return
  }
  func.func @transform_0(%arg0: i32, %arg1: i32) -> (i32, i32) {
    %c0_i32 = arith.constant 0 : i32
    %c0_i32_0 = arith.constant 0 : i32
    return %arg0, %c0_i32 : i32, i32
  }
  func.func @transform_1(%arg0: i32, %arg1: i32) -> (i32, i32) {
    %c0_i32 = arith.constant 0 : i32
    %c0_i32_0 = arith.constant 0 : i32
    return %c0_i32, %arg1 : i32, i32
  }
  func.func @transform_2(%arg0: i32, %arg1: i32) -> (i32, i32) {
    %c0_i32 = arith.constant 0 : i32
    %c0_i32_0 = arith.constant 0 : i32
    return %c0_i32, %arg1 : i32, i32
  }
  func.func @transform_3(%arg0: i32, %arg1: i32) -> (i32, i32) {
    %c0_i32 = arith.constant 0 : i32
    %c0_i32_0 = arith.constant 0 : i32
    return %arg1, %c0_i32 : i32, i32
  }
  func.func @transform_4(%arg0: i32, %arg1: i32) -> (i32, i32) {
    %c0_i32 = arith.constant 0 : i32
    %c0_i32_0 = arith.constant 0 : i32
    %c0_i32_1 = arith.constant 0 : i32
    return %c0_i32, %c0_i32_0 : i32, i32
  }
  func.func @transform_5(%arg0: i32, %arg1: i32) -> (i32, i32) {
    %c0_i32 = arith.constant 0 : i32
    %c0_i32_0 = arith.constant 0 : i32
    %c0_i32_1 = arith.constant 0 : i32
    return %c0_i32, %c0_i32_0 : i32, i32
  }
  func.func @transform_6(%arg0: i32, %arg1: i32) -> (i32, i32) {
    %c0_i32 = arith.constant 0 : i32
    %c0_i32_0 = arith.constant 0 : i32
    %c0_i32_1 = arith.constant 0 : i32
    return %c0_i32, %c0_i32_0 : i32, i32
  }
  func.func @transform_7(%arg0: i32, %arg1: i32) -> (i32, i32) {
    %c0_i32 = arith.constant 0 : i32
    %c0_i32_0 = arith.constant 0 : i32
    return %arg0, %c0_i32 : i32, i32
  }
}

</mosaic_0001>

<bundles_post_ra>
// kernel: tpu_custom_call.1
= control target key start
LH: loop header
LB: loop body
LE: loop exit
PB: predicated region body
PF: predicated region fallthrough
CT: control target
= control target key end

     0   :  { %vm38_vm0 = vcmask 261120   ;;  %s544_s0 = inlined_call_operand.vmem [shape: f32[16,32], index: 0, kind: input, shape index: {}]   ;;  %s545_s1 = inlined_call_operand.vmem [shape: f32[32,64], index: 1, kind: input, shape index: {}]   ;;  %s546_s2 = inlined_call_operand.vmem [shape: f32[1,64], index: 2, kind: input, shape index: {}]   ;;  %s547_s3 = inlined_call_operand.vmem [shape: f32[64,32], index: 3, kind: input, shape index: {}]   ;;  %s548_s4 = inlined_call_operand.vmem [shape: f32[1,32], index: 4, kind: input, shape index: {}]   ;;  %s549_s5 = inlined_call_operand.vmem [shape: f32[1,32], index: 5, kind: input, shape index: {}]   ;;  %s550_s6 = inlined_call_operand.vmem [shape: f32[1,32], index: 6, kind: input, shape index: {}]   ;;  %s551_s7 = inlined_call_operand.hbm [shape: f32[16,32], index: 7, kind: output, shape index: {}]  }
   0x1   :  { %v43_v0 = vld [vmem:[%s545_s1] sm:$0xff]  ;;  %v44_v1 = vld [vmem:[%s545_s1 + $0x8] sm:$0xff]  ;;  %v45_v2 = vld [vmem:[%s545_s1 + $0x10] sm:$0xff] }
   0x2   :  { %v364_v3 = vpack.c.bf16 %v44_v1, %v43_v0  ;;  %v46_v4 = vld [vmem:[%s545_s1 + $0x18] sm:$0xff]  ;;  %v41_v5 = vld [vmem:[%s544_s0] sm:$0xff] }
   0x3   :  { %v368_v6 = vpack.c.bf16 %v46_v4, %v45_v2  ;;  %342 = vmatprep.mubr.msk.f32.mxu0 %vm38_vm0, %v41_v5 }
   0x4   :  { %12 = vsyncpa [#allocation4], 0  ;;  %365 = vmatprep.subr.bf16.mxu0 %v364_v3  ;;  %v42_v7 = vld [vmem:[%s544_s0 + $0x8] sm:$0xff]  ;;  %v148_v8 = vld [vmem:[%s547_s3] sm:$0xff]  ;;  %vm156_vm1 = vcmask 523264   ;;  %s423_s9 = smov [#allocation3]  }
   0x5   :  { %367 = vmatpush3.bf16.msra.mxu0 %v364_v3  ;;  %v149_v9 = vld [vmem:[%s547_s3 + $0x8] sm:$0xff]  ;;  %v150_v11 = vld [vmem:[%s547_s3 + $0x10] sm:$0xff]  ;;  %v151_v12 = vld [vmem:[%s547_s3 + $0x18] sm:$0xff]  ;;  %s299_s10 = sshll.u32 %s423_s9, 4  ;;  %s300_s10 = int_to_ptr.vmem [resolvable:$true] %s299_s10 }
   0x6   :  { %369 = vmatprep.subr.bf16.mxu0 %v368_v6  ;;  %v372_v10 = vpack.c.bf16 %v149_v9, %v148_v8  ;;  %v376_v13 = vpack.c.bf16 %v151_v12, %v150_v11  ;;  %v152_v14 = vld [vmem:[%s547_s3 + $0x20] sm:$0xff]  ;;  %v153_v15 = vld [vmem:[%s547_s3 + $0x28] sm:$0xff]  ;;  %v154_v17 = vld [vmem:[%s547_s3 + $0x30] sm:$0xff]  ;;  %s399_s11 = scalar_lea.vmem %s300_s10, 256  ;;  %p404_p1 = scmp.lt.s32.totalorder %s300_s10, %s300_s10 }
   0x7   :  { %v380_v16 = vpack.c.bf16 %v153_v15, %v152_v14  ;;  %v155_v18 = vld [vmem:[%s547_s3 + $0x38] sm:$0xff]  ;;  %v310_v20 = vld [vmem:[%s548_s4] ss:$0 sm:$0xff]  ;;  %p400_p0 = scmp.ne.s32.totalorder %s300_s10, %s399_s11  ;;  %p405_p2 = scmp.lt.s32.totalorder %s399_s11, %s399_s11 }
   0x8   :  { %373 = vmatprep.subr.bf16.mxu1 %v372_v10  ;;  %v384_v19 = vpack.c.bf16 %v155_v18, %v154_v17  ;;  %40 = vst.msk [vmem:[#allocation2 + $0x8] sm:$0xff] %vm38_vm0, %v310_v20  ;;  %39 = vst.msk [vmem:[#allocation2] sm:$0xff] %vm38_vm0, %v310_v20  ;;  %v311_v21 = vld [vmem:[%s546_s2] ss:$0 sm:$0xff] }
   0x9   :  { %371 = vmatpush3.bf16.msra.mxu0 %v368_v6  ;;  %375 = vmatpush3.bf16.msra.mxu1 %v372_v10  ;;  %v316_v63 = vld [vmem:[%s549_s5] ss:$0 sm:$0xff]  ;;  %p406_p3 = por %p405_p2, %p404_p1 }
   0xa   :  { %377 = vmatprep.subr.bf16.mxu1 %v376_v13  ;;  %v317_v1 = vld [vmem:[%s550_s6] ss:$0 sm:$0xff] }
   0xb   :  { %p407_p4 = pnand %p406_p3, %p400_p0 }
   0xc   :  { %343 = vmatmul.mubr.msk.f32.vlgmr.msra.gmra.mrb[0].mxu0 %vm38_vm0, %v42_v7 }
   0xd   :  { %379 = vmatpush3.bf16.msra.mxu1 %v376_v13 }
   0xe   :  { %381 = vmatprep.subr.bf16.mxu1 %v380_v16 }
   0xf   :  { %v147_v36 = vld [vmem:[#allocation2 + $0x8] sm:$0xff]  ;;  %v146_v37 = vld [vmem:[#allocation2] sm:$0xff] }
  0x11   :  { %383 = vmatpush3.bf16.msra.mxu1 %v380_v16 }
  0x12   :  { %385 = vmatprep.subr.bf16.mxu1 %v384_v19 }
  0x15   :  { %387 = vmatpush3.bf16.msra.mxu1 %v384_v19 }
  0xdf   :  { %v344_v22 = vpop.f32.mrb[0].mxu0 }
  0xe0   :  { %v133_v23 = vadd.f32 %v344_v22, %v311_v21  ;;  %v127_v24 = vpop.f32.mrb[1].mxu0 }
  0xe1   :  { %v128_v25 = vadd.f32 %v311_v21, %v127_v24 }
  0xe2   :  { %v139_v26 = vmul.f32 0.70710677, %v133_v23  ;;  %v137_v33 = vmul.f32 0.5, %v133_v23 }
  0xe3   :  { %v138_v27 = vmul.f32 0.70710677, %v128_v25  ;;  %v136_v31 = vmul.f32 0.5, %v128_v25 }
  0xe4   :  { %391 = verf.f32 %v139_v26 }
  0xe5   :  { %393 = verf.f32 %v138_v27 }
  0xee   :  { %v392_v28 = vpop.eup %391 }
  0xef   :  { %v394_v29 = vpop.eup %393  ;;  %v143_v30 = vadd.f32 1.0, %v392_v28 }
  0xf0   :  { %v142_v32 = vadd.f32 1.0, %v394_v29 }
  0xf1   :  { %v145_v35 = vmul.f32 %v143_v30, %v137_v33 }
  0xf2   :  { %v144_v34 = vmul.f32 %v142_v32, %v136_v31 }
  0xf4   :  { %361 = vmatprep.mubr.msk.f32.mxu1 %vm156_vm1, %v144_v34 }
  0xf5   :  { %362 = vmatmul.mubr.msk.f32.vlgmr.msra.gmra.mrb[0].mxu1 %vm156_vm1, %v145_v35 }
 0x1c8   :  { %v363_v38 = vpop.f32.mrb[0].mxu1 }
 0x1c9   :  { %v239_v39 = vadd.f32 %v363_v38, %v147_v36  ;;  %v229_v40 = vpop.f32.mrb[1].mxu1 }
 0x1ca   :  { %v238_v41 = vadd.f32 %v229_v40, %v146_v37 }
 0x1cb   :  { %241 = vst.msk [vmem:[#allocation2 + $0x8] sm:$0xff] %vm38_vm0, %v239_v39 }
 0x1cc   :  { %240 = vst.msk [vmem:[#allocation2] sm:$0xff] %vm38_vm0, %v238_v41 }
 0x1d2   :  { %v246_v44 = vld [vmem:[#allocation2 + $0x8] sm:$0xff] }
 0x1d3   :  { %v245_v42 = vld [vmem:[#allocation2] sm:$0xff]  ;;  %v250_v45 = vsel %vm38_vm0, %v246_v44, 0.0 }
 0x1d4   :  { %v247_v43 = vsel %vm38_vm0, %v245_v42, 0.0 }
 0x1d5   :  { %248 = vadd.xlane.f32.xlu0 %v247_v43 }
 0x1d9   :  { %251 = vadd.xlane.f32.xlu0 %v250_v45 }
 0x262   :  { %v249_v46 = vpop.xlane.xlu0 %248 }
 0x263   :  { %v254_v47 = vmul.f32 0.03125, %v249_v46 }
 0x265   :  { %v256_v48 = vsub.f32 %v245_v42, %v254_v47 }
 0x266   :  { %v252_v49 = vpop.xlane.xlu0 %251 }
 0x267   :  { %v255_v50 = vmul.f32 0.03125, %v252_v49  ;;  %v258_v51 = vmul.f32 %v256_v48, %v256_v48 }
 0x269   :  { %v257_v52 = vsub.f32 %v246_v44, %v255_v50  ;;  %v260_v53 = vsel %vm38_vm0, %v258_v51, 0.0 }
 0x26a   :  { %261 = vadd.xlane.f32.xlu1 %v260_v53 }
 0x26b   :  { %v259_v54 = vmul.f32 %v257_v52, %v257_v52 }
 0x26d   :  { %v263_v55 = vsel %vm38_vm0, %v259_v54, 0.0 }
 0x26e   :  { %264 = vadd.xlane.f32.xlu1 %v263_v55 }
 0x2f7   :  { %v262_v56 = vpop.xlane.xlu1 %261 }
 0x2f8   :  { %v266_v57 = vmul.f32 0.03125, %v262_v56 }
 0x2fa   :  { %v268_v58 = vadd.f32 1e-06, %v266_v57 }
 0x2fb   :  { %v265_v59 = vpop.xlane.xlu1 %264 }
 0x2fc   :  { %395 = vrsqrt.f32 %v268_v58  ;;  %v267_v60 = vmul.f32 0.03125, %v265_v59 }
 0x2fe   :  { %v269_v61 = vadd.f32 1e-06, %v267_v60 }
 0x300   :  { %397 = vrsqrt.f32 %v269_v61 }
 0x306   :  { %v396_v62 = vpop.eup %395 }
 0x307   :  { %v272_v0 = vmul.f32 %v396_v62, %v256_v48 }
 0x309   :  { %v281_v2 = vmul.f32 %v316_v63, %v272_v0 }
 0x30a   :  { %v398_v3 = vpop.eup %397 }
 0x30b   :  { %v273_v4 = vmul.f32 %v398_v3, %v257_v52  ;;  %v290_v5 = vadd.f32 %v317_v1, %v281_v2 }
 0x30d   :  { %v282_v6 = vmul.f32 %v316_v63, %v273_v4  ;;  %292 = vst.msk [vmem:[#allocation3] sm:$0xff] %vm38_vm0, %v290_v5 }
 0x30f   :  { %v291_v7 = vadd.f32 %v317_v1, %v282_v6 }
 0x311   :  { %293 = vst.msk [vmem:[#allocation3 + $0x8] sm:$0xff] %vm38_vm0, %v291_v7 }
 0x312   :  { %410 = shalt.err (!%p407_p4)
}
 0x313   :  { %s411_s12 = scalar_lea.hbm %s551_s7, 256 }
 0x314   :  { %p412_p5 = scmp.ne.s32.totalorder %s551_s7, %s411_s12  ;;  %p415_p6 = scmp.lt.u32.totalorder %s411_s12, %s551_s7 }
 0x316   :  { %p417_p7 = pnand %p415_p6, %p412_p5 }
 0x318   :  { %420 = shalt.err (!%p417_p7)
}
 0x319   :  { %s424_s16 = smov 128   ;;  %s425_s17 = smov 8  }
 0x31a   :  { %305 = dma.vmem_to_hbm [thread:$0]  %s300_s10, 256, %s551_s7, [#allocation4], %s424_s16, %s424_s16, %s425_s17  }
 0x31b   :  { %421 = dma.done.wait [#allocation4], 256  }
 0x31c   :  { %422 = vsyncadd [#allocation4], 4294967040 }
 0x31d   :  { %309 = vsyncpa [#allocation4], 1 }

</bundles_post_ra>
